<compile_context>
chip_gen: v7x
topology: tpu7x:2x2x1
jax: 0.10.0
libtpu: 0.0.40
codegen_flags: <defaults>
</compile_context>

<pallas_src>
import jax
import jax.numpy as jnp
from jax import lax
from jax.experimental import pallas as pl
from jax.experimental.pallas import tpu as pltpu

# module hyper-params (s_len is a module-level global in the original file)
S_LEN = 16
INPUT_DIM = 32
BATCH = 2
SEQ = 8


def _ndecoder_kernel(x_ref, w_ref, bias_ref, o_ref):
    # x_ref:    (tm, K)  activation row tile
    # w_ref:    (N, K)   L1.weight (PyTorch layout, NOT transposed)
    # bias_ref: (1, N)   L1.bias + b1.weight (folded in wrapper)
    # o_ref:    (tm, N)
    acc = lax.dot_general(
        x_ref[...], w_ref[...],
        dimension_numbers=(((1,), (1,)), ((), ())),   # contract K with K
        preferred_element_type=jnp.float32)
    o_ref[...] = jnp.tanh(acc + bias_ref[...]).astype(o_ref.dtype)


def ndecoder_forward(z, l1_weight, l1_bias, b1_weight, *, tm=1024):
    """z: (B, S, D) float32; returns (B, S, s_len) float32."""
    B, S, D = z.shape
    N = l1_weight.shape[0]
    M = B * S

    x = z.reshape(M, D)
    # Fold b1 (constant additive bias) into L1.bias at call time so the kernel
    # has one fewer input; done per-call so a trained b1 is still honored.
    bias_eff = (l1_bias + b1_weight.reshape(-1)).reshape(1, N).astype(z.dtype)

    # Row tiling: one tile if small, otherwise tm-row tiles (tm multiple of 8).
    tm = min(tm, M)
    m_pad = pl.cdiv(M, tm) * tm
    if m_pad != M:
        x = jnp.pad(x, ((0, m_pad - M), (0, 0)))
    grid = (m_pad // tm,)

    out = pl.pallas_call(
        _ndecoder_kernel,
        out_shape=jax.ShapeDtypeStruct((m_pad, N), z.dtype),
        grid_spec=pltpu.PrefetchScalarGridSpec(
            num_scalar_prefetch=0,
            grid=grid,
            in_specs=[
                pl.BlockSpec((tm, D), lambda i: (i, 0)),   # activations
                pl.BlockSpec((N, D), lambda i: (0, 0)),    # weight (resident)
                pl.BlockSpec((1, N), lambda i: (0, 0)),    # fused bias
            ],
            out_specs=pl.BlockSpec((tm, N), lambda i: (i, 0)),
        ),
        compiler_params=pltpu.CompilerParams(
            dimension_semantics=("parallel",)),            # row tiles independent
    )(x, l1_weight, bias_eff)

    if m_pad != M:
        out = out[:M]
    return out.reshape(B, S, N)


def init_params(key, input_dim, s_len):
    k_w, k_b = jax.random.split(key)
    # xavier_normal_ for L1.weight: std = sqrt(2 / (fan_in + fan_out))
    std = jnp.sqrt(2.0 / (input_dim + s_len))
    l1_weight = std * jax.random.normal(k_w, (s_len, input_dim), jnp.float32)
    # default PyTorch Linear bias init: U(-1/sqrt(fan_in), 1/sqrt(fan_in))
    bound = 1.0 / jnp.sqrt(input_dim)
    l1_bias = jax.random.uniform(k_b, (s_len,), jnp.float32, -bound, bound)
    # b1.weight.data.fill_(0)
    b1_weight = jnp.zeros((1, s_len), jnp.float32)
    return l1_weight, l1_bias, b1_weight


if __name__ == "__main__":
    key = jax.random.PRNGKey(0)
    k_z, k_p = jax.random.split(key)

    z = jax.random.normal(k_z, (BATCH, SEQ, INPUT_DIM), jnp.float32)
    l1_weight, l1_bias, b1_weight = init_params(k_p, INPUT_DIM, S_LEN)

    out = ndecoder_forward(z, l1_weight, l1_bias, b1_weight)
    jax.block_until_ready(out)

    # correctness check against pure-JAX reference of the PyTorch forward
    ref = jnp.tanh(z @ l1_weight.T + l1_bias + b1_weight)
    assert out.shape == (BATCH, SEQ, S_LEN)
    assert jnp.allclose(out, ref, atol=1e-5, rtol=1e-5)

    print("KERNEL_OK")
</pallas_src>

<mosaic_0001>
module attributes {stable_mosaic.version = 11 : i64} {
  func.func @_ndecoder_kernel(%arg0: i32, %arg1: memref<16x32xf32, #tpu.memory_space<vmem>>, %arg2: memref<16x32xf32, #tpu.memory_space<vmem>>, %arg3: memref<1x16xf32, #tpu.memory_space<vmem>>, %arg4: memref<16x16xf32, #tpu.memory_space<vmem>>) attributes {dimension_semantics = [#tpu.dimension_semantics<parallel>], iteration_bounds = array<i64: 1>, scalar_prefetch = 0 : i64, scratch_operands = 0 : i64, tpu.core_type = #tpu.core_type<tc>, window_params = [{transform_indices = @transform_0, window_bounds = array<i64: 16, 32>}, {pipeline_mode = #tpu.pipeline_mode<synchronous>, transform_indices = @transform_1, window_bounds = array<i64: 16, 32>}, {pipeline_mode = #tpu.pipeline_mode<synchronous>, transform_indices = @transform_2, window_bounds = array<i64: 1, 16>}, {transform_indices = @transform_3, window_bounds = array<i64: 16, 16>}]} {
    %c0 = arith.constant 0 : index
    %c0_0 = arith.constant 0 : index
    %0 = vector.load %arg1[%c0, %c0_0] : memref<16x32xf32, #tpu.memory_space<vmem>>, vector<16x32xf32>
    %c0_1 = arith.constant 0 : index
    %c0_2 = arith.constant 0 : index
    %1 = vector.load %arg2[%c0_1, %c0_2] : memref<16x32xf32, #tpu.memory_space<vmem>>, vector<16x32xf32>
    %cst = arith.constant dense<0.000000e+00> : vector<16x16xf32>
    %2 = tpu.matmul %0, %1, %cst {dimension_numbers = #tpu.dot_dimension_numbers<[1], [1], [0], [0], [0, 0, 1, 0], [], []>} : vector<16x32xf32>, vector<16x32xf32>, vector<16x16xf32> -> vector<16x16xf32>
    %c0_3 = arith.constant 0 : index
    %c0_4 = arith.constant 0 : index
    %3 = vector.load %arg3[%c0_3, %c0_4] : memref<1x16xf32, #tpu.memory_space<vmem>>, vector<1x16xf32>
    %4 = vector.broadcast %3 : vector<1x16xf32> to vector<16x16xf32>
    %5 = arith.addf %2, %4 : vector<16x16xf32>
    %6 = math.tanh %5 : vector<16x16xf32>
    %c0_5 = arith.constant 0 : index
    %c0_6 = arith.constant 0 : index
    %7 = vector.load %arg4[%c0_5, %c0_6] : memref<16x16xf32, #tpu.memory_space<vmem>>, vector<16x16xf32>
    tpu.vector_store %arg4[%c0_5, %c0_6], %6 {strides = array<i32>} : memref<16x16xf32, #tpu.memory_space<vmem>>, vector<16x16xf32>,
    return
  }
  func.func @transform_0(%arg0: i32) -> (i32, i32) {
    %c0_i32 = arith.constant 0 : i32
    %c0_i32_0 = arith.constant 0 : i32
    return %arg0, %c0_i32 : i32, i32
  }
  func.func @transform_1(%arg0: i32) -> (i32, i32) {
    %c0_i32 = arith.constant 0 : i32
    %c0_i32_0 = arith.constant 0 : i32
    %c0_i32_1 = arith.constant 0 : i32
    return %c0_i32, %c0_i32_0 : i32, i32
  }
  func.func @transform_2(%arg0: i32) -> (i32, i32) {
    %c0_i32 = arith.constant 0 : i32
    %c0_i32_0 = arith.constant 0 : i32
    %c0_i32_1 = arith.constant 0 : i32
    return %c0_i32, %c0_i32_0 : i32, i32
  }
  func.func @transform_3(%arg0: i32) -> (i32, i32) {
    %c0_i32 = arith.constant 0 : i32
    %c0_i32_0 = arith.constant 0 : i32
    return %arg0, %c0_i32 : i32, i32
  }
}

</mosaic_0001>

<bundles_post_ra>
// kernel: tpu_custom_call.1
= control target key start
LH: loop header
LB: loop body
LE: loop exit
PB: predicated region body
PF: predicated region fallthrough
CT: control target
= control target key end

     0   :  { %8 = vsyncpa [#allocation3], 0  ;;  %s341_s0 = inlined_call_operand.hbm [shape: f32[16,32], index: 0, kind: input, shape index: {}]   ;;  %s342_s1 = inlined_call_operand.hbm [shape: f32[16,32], index: 1, kind: input, shape index: {}]   ;;  %s343_s2 = inlined_call_operand.vmem [shape: f32[1,16], index: 2, kind: input, shape index: {}]   ;;  %s344_s3 = inlined_call_operand.hbm [shape: f32[16,16], index: 3, kind: output, shape index: {}]  }
   0x1   :  { %9 = vsyncpa [#allocation6], 0 }
   0x2   :  { %10 = vsyncpa [#allocation4], 0  ;;  %s268_s12 = smov [#allocation2]   ;;  %s196_s16 = scalar_lea.hbm %s341_s0, 256 }
   0x3   :  { %s16_s13 = sshll.u32 %s268_s12, 4  ;;  %p197_p0 = scmp.ne.s32.totalorder %s341_s0, %s196_s16  ;;  %s17_s13 = int_to_ptr.vmem [resolvable:$true] %s16_s13 }
   0x4   :  { %p200_p1 = scmp.lt.u32.totalorder %s196_s16, %s341_s0 }
   0x6   :  { %p202_p2 = pnand %p200_p1, %p197_p0 }
   0x8   :  { %205 = shalt.err (!%p202_p2)
}
   0x9   :  { %s206_s21 = scalar_lea.vmem %s17_s13, 256  ;;  %p211_p4 = scmp.lt.s32.totalorder %s17_s13, %s17_s13 }
   0xa   :  { %p207_p3 = scmp.ne.s32.totalorder %s17_s13, %s206_s21  ;;  %p212_p5 = scmp.lt.s32.totalorder %s206_s21, %s206_s21 }
   0xc   :  { %p213_p6 = por %p212_p5, %p211_p4 }
   0xe   :  { %p214_p7 = pnand %p213_p6, %p207_p3 }
  0x10   :  { %217 = shalt.err (!%p214_p7)
}
  0x11   :  { %s269_s22 = smov 128   ;;  %s270_s23 = smov 8  }
  0x12   :  { %22 = dma.hbm_to_vmem [thread:$0]  %s341_s0, 256, %s17_s13, [#allocation3], %s269_s22, %s269_s22, %s270_s23  }
  0x13   :  { %s271_s26 = smov [#allocation5]   ;;  %s218_s30 = scalar_lea.hbm %s342_s1, 256 }
  0x14   :  { %s28_s27 = sshll.u32 %s271_s26, 4  ;;  %p219_p8 = scmp.ne.s32.totalorder %s342_s1, %s218_s30  ;;  %s29_s27 = int_to_ptr.vmem [resolvable:$true] %s28_s27 }
  0x15   :  { %p222_p9 = scmp.lt.u32.totalorder %s218_s30, %s342_s1 }
  0x17   :  { %p224_p10 = pnand %p222_p9, %p219_p8 }
  0x19   :  { %227 = shalt.err (!%p224_p10)
}
  0x1a   :  { %s228_s8 = scalar_lea.vmem %s29_s27, 256  ;;  %p233_p12 = scmp.lt.s32.totalorder %s29_s27, %s29_s27 }
  0x1b   :  { %p229_p11 = scmp.ne.s32.totalorder %s29_s27, %s228_s8  ;;  %p234_p13 = scmp.lt.s32.totalorder %s228_s8, %s228_s8 }
  0x1d   :  { %p235_p0 = por %p234_p13, %p233_p12 }
  0x1f   :  { %p236_p1 = pnand %p235_p0, %p229_p11 }
  0x21   :  { %239 = shalt.err (!%p236_p1)
}
  0x22   :  { %34 = dma.hbm_to_vmem [thread:$0]  %s342_s1, 256, %s29_s27, [#allocation6], %s269_s22, %s269_s22, %s270_s23  }
  0x23   :  { %262 = dma.done.wait [#allocation3], 256  }
  0x24   :  { %263 = vsyncadd [#allocation3], 4294967040 }
  0x25   :  { %264 = dma.done.wait [#allocation6], 256  }
  0x26   :  { %265 = vsyncadd [#allocation6], 4294967040  ;;  %vm54_vm0 = vcmask 261120   ;;  %v45_v0 = vld [vmem:[#allocation5] sm:$0xff]  ;;  %v46_v1 = vld [vmem:[#allocation5 + $0x8] sm:$0xff]  ;;  %s272_s1 = smov [#allocation7]  }
  0x27   :  { %vm182_vm1 = vmpackc.low %vm54_vm0, %vm54_vm0  ;;  %v43_v2 = vld [vmem:[#allocation2] sm:$0xff]  ;;  %v181_v3 = vpack.c.bf16 %v46_v1, %v45_v0  ;;  %v44_v4 = vld [vmem:[#allocation2 + $0x8] sm:$0xff]  ;;  %s152_s12 = sshll.u32 %s272_s1, 4  ;;  %vm144_vm2 = vcmask 130048   ;;  %s153_s12 = int_to_ptr.vmem [resolvable:$true] %s152_s12 }
  0x28   :  { %178 = vmatprep.mubr.msk.f32.mxu0 %vm54_vm0, %v43_v2  ;;  %v165_v5 = vld [vmem:[%s343_s2] ss:$0 sm:$0xff]  ;;  %s240_s13 = scalar_lea.vmem %s153_s12, 256  ;;  %p245_p3 = scmp.lt.s32.totalorder %s153_s12, %s153_s12 }
  0x29   :  { %183 = vmatprep.subr.msk.bf16.mxu0 %vm182_vm1, %v181_v3  ;;  %p241_p2 = scmp.ne.s32.totalorder %s153_s12, %s240_s13  ;;  %p246_p4 = scmp.lt.s32.totalorder %s240_s13, %s240_s13 }
  0x2a   :  { %186 = vmatpush3.bf16.xpose.msk.msra.mxu0 %vm182_vm1, %v181_v3 }
  0x2b   :  { %p247_p5 = por %p246_p4, %p245_p3 }
  0x2d   :  { %p248_p6 = pnand %p247_p5, %p241_p2 }
  0x31   :  { %179 = vmatmul.mubr.msk.f32.vlgmr.msra.gmra.mrb[0].mxu0 %vm54_vm0, %v44_v4 }
 0x104   :  { %v180_v6 = vpop.f32.mrb[0].mxu0 }
 0x105   :  { %v139_v7 = vadd.f32 %v180_v6, %v165_v5  ;;  %v133_v8 = vpop.f32.mrb[1].mxu0 }
 0x106   :  { %v134_v9 = vadd.f32 %v165_v5, %v133_v8 }
 0x107   :  { %192 = vtanh.f32 %v139_v7 }
 0x108   :  { %194 = vtanh.f32 %v134_v9 }
 0x111   :  { %v193_v10 = vpop.eup %192 }
 0x112   :  { %v195_v11 = vpop.eup %194  ;;  %146 = vst.msk [vmem:[#allocation7 + $0x8] sm:$0xff] %vm144_vm2, %v193_v10 }
 0x113   :  { %145 = vst.msk [vmem:[#allocation7] sm:$0xff] %vm144_vm2, %v195_v11 }
 0x114   :  { %251 = shalt.err (!%p248_p6)
}
 0x115   :  { %s252_s15 = scalar_lea.hbm %s344_s3, 256 }
 0x116   :  { %p253_p7 = scmp.ne.s32.totalorder %s344_s3, %s252_s15  ;;  %p256_p8 = scmp.lt.u32.totalorder %s252_s15, %s344_s3 }
 0x118   :  { %p258_p9 = pnand %p256_p8, %p253_p7 }
 0x11a   :  { %261 = shalt.err (!%p258_p9)
}
 0x11b   :  { %158 = dma.vmem_to_hbm [thread:$0]  %s153_s12, 256, %s344_s3, [#allocation4], %s269_s22, %s269_s22, %s270_s23  }
 0x11c   :  { %266 = dma.done.wait [#allocation4], 256  }
 0x11d   :  { %267 = vsyncadd [#allocation4], 4294967040 }
 0x11e   :  { %162 = vsyncpa [#allocation3], 1 }
 0x11f   :  { %163 = vsyncpa [#allocation6], 1 }
 0x120   :  { %164 = vsyncpa [#allocation4], 1 }

</bundles_post_ra>
